<compile_context>
chip_gen: v7x
topology: tpu7x:2x2x1
jax: 0.10.0
libtpu: 0.0.40
codegen_flags: <defaults>
</compile_context>

<pallas_src>
import jax
import jax.numpy as jnp
from jax.experimental import pallas as pl
from jax.experimental.pallas import tpu as pltpu


def _round_up(x, m):
    return ((x + m - 1) // m) * m


# ----------------------------------------------------------------------------
# Kernel
# ----------------------------------------------------------------------------
def qa_kernel(a_ref, q_ref, w1a_ref, w1q_ref, b1_ref, w2_ref, b2_ref, out_ref):
    # In-kernel bf16 cast of the streamed activations (VPU work, effectively
    # free; keeps activation HBM traffic at 4 B/elem while the MXU gets bf16).
    a = a_ref[...].astype(jnp.bfloat16)
    q = q_ref[...].astype(jnp.bfloat16)

    # fc1 on the concatenated embedding, split into the two weight halves:
    #   cat(a, q) @ W1 == a @ W1[:E] + q @ W1[E:]
    # (Split form is optimal on v5e's 4x128 MXU.  On v6e/v7x a single K=2E dot
    #  would fill the 256-deep MXU in one pass — portability favored here.)
    h = (
        jnp.dot(a, w1a_ref[...], preferred_element_type=jnp.float32)
        + jnp.dot(q, w1q_ref[...], preferred_element_type=jnp.float32)
        + b1_ref[...]
    )
    h = jnp.maximum(h, 0.0)  # ReLU in f32 on the VPU.

    # fc2: bf16 operands, f32 accumulation.
    logits = (
        jnp.dot(h.astype(jnp.bfloat16), w2_ref[...],
                preferred_element_type=jnp.float32)
        + b2_ref[...]
    )

    # Only the first O (= out_ref.shape[1]) lanes are real (W2/b2 were lane
    # padded); drop the padding before the store so the HBM write is O wide.
    out_ref[...] = logits[:, : out_ref.shape[1]].astype(out_ref.dtype)


# ----------------------------------------------------------------------------
# One-time parameter prep (hoisted out of the forward path)
# ----------------------------------------------------------------------------
def prepare_params(fc1_w, fc1_b, fc2_w, fc2_b, emb_dim):
    """Transpose to (in, out) layout, split W1 into article/question halves,
    zero-pad hidden/output lanes to 128-multiples, and cast matmul operands to
    bf16.  Do this ONCE (at init), not per forward call."""
    H = fc1_w.shape[0]
    O = fc2_w.shape[0]
    Hp = _round_up(H, 128)
    Op = _round_up(O, 128)
    f32, bf16 = jnp.float32, jnp.bfloat16

    def pad2(x, rows, cols, dtype):
        buf = jnp.zeros((rows, cols), dtype)
        return buf.at[: x.shape[0], : x.shape[1]].set(x.astype(dtype))

    w1 = fc1_w.T                      # (2E, H)
    w1a = w1[:emb_dim]                # (E, H)
    w1q = w1[emb_dim:]                # (E, H)

    w1a_p = pad2(w1a, emb_dim, Hp, bf16)              # (E, Hp) bf16
    w1q_p = pad2(w1q, emb_dim, Hp, bf16)              # (E, Hp) bf16
    b1_p = pad2(fc1_b.reshape(1, -1), 1, Hp, f32)     # (1, Hp) f32
    w2_p = pad2(fc2_w.T, Hp, Op, bf16)                # (Hp, Op) bf16
    b2_p = pad2(fc2_b.reshape(1, -1), 1, Op, f32)     # (1, Op) f32

    return dict(w1a=w1a_p, w1q=w1q_p, b1=b1_p, w2=w2_p, b2=b2_p,
                num_options=O)


def _choose_batch_tile(B, batch_tile):
    if B <= batch_tile:
        # Split small batches into (at least) two tiles so both v7x TensorCores
        # get work under dimension_semantics=("parallel",).
        tb = _round_up(max(1, -(-B // 2)), 8)
        return max(8, tb)
    return batch_tile


# ----------------------------------------------------------------------------
# Forward wrapper
# ----------------------------------------------------------------------------
def qa_model_forward(article_emb, question_emb, options_emb, prepped,
                     *, batch_tile=512):
    """Pallas forward.  options_emb is unused (matches the PyTorch forward)."""
    del options_emb  # unused by QAModel.forward

    B, E = article_emb.shape
    Hp = prepped["w1a"].shape[1]
    Op = prepped["w2"].shape[1]
    O = prepped["num_options"]

    TB = _choose_batch_tile(B, batch_tile)
    grid = (pl.cdiv(B, TB),)  # ragged last tile handled by Pallas masking

    return pl.pallas_call(
        qa_kernel,
        out_shape=jax.ShapeDtypeStruct((B, O), jnp.float32),
        grid=grid,
        in_specs=[
            pl.BlockSpec((TB, E), lambda i: (i, 0)),    # article tile (streamed f32)
            pl.BlockSpec((TB, E), lambda i: (i, 0)),    # question tile (streamed f32)
            pl.BlockSpec((E, Hp), lambda i: (0, 0)),    # W1 article half (resident bf16)
            pl.BlockSpec((E, Hp), lambda i: (0, 0)),    # W1 question half (resident bf16)
            pl.BlockSpec((1, Hp), lambda i: (0, 0)),    # b1 (resident f32)
            pl.BlockSpec((Hp, Op), lambda i: (0, 0)),   # W2 (resident bf16)
            pl.BlockSpec((1, Op), lambda i: (0, 0)),    # b2 (resident f32)
        ],
        out_specs=pl.BlockSpec((TB, O), lambda i: (i, 0)),
        compiler_params=pltpu.CompilerParams(
            dimension_semantics=("parallel",)),
    )(article_emb, question_emb,
      prepped["w1a"], prepped["w1q"], prepped["b1"],
      prepped["w2"], prepped["b2"])


# ----------------------------------------------------------------------------
# Init + references
# ----------------------------------------------------------------------------
def init_params(key, emb_dim, hidden_dim, num_options):
    """Deterministic synthetic parameters in PyTorch nn.Linear layout."""
    k1, k2, k3, k4 = jax.random.split(key, 4)
    input_dim = 2 * emb_dim
    fc1_w = jax.random.normal(k1, (hidden_dim, input_dim), jnp.float32) * 0.02
    fc1_b = jax.random.normal(k2, (hidden_dim,), jnp.float32) * 0.02
    fc2_w = jax.random.normal(k3, (num_options, hidden_dim), jnp.float32) * 0.02
    fc2_b = jax.random.normal(k4, (num_options,), jnp.float32) * 0.02
    return fc1_w, fc1_b, fc2_w, fc2_b


def _bf16_rt(x):
    """Round-trip through bfloat16 (mirrors the kernel's operand quantization)."""
    return x.astype(jnp.bfloat16).astype(jnp.float32)


def reference_forward_bf16(article_emb, question_emb, raw_params, emb_dim):
    """Plain-JAX reference with the same bf16 operand quantization as the kernel."""
    fc1_w, fc1_b, fc2_w, fc2_b = raw_params
    w1 = fc1_w.T
    w1a, w1q = w1[:emb_dim], w1[emb_dim:]
    h = (_bf16_rt(article_emb) @ _bf16_rt(w1a)
         + _bf16_rt(question_emb) @ _bf16_rt(w1q) + fc1_b)
    h = jnp.maximum(h, 0.0)
    return _bf16_rt(h) @ _bf16_rt(fc2_w.T) + fc2_b


def reference_forward_f32(article_emb, question_emb, raw_params):
    """Full-precision reference mirroring the PyTorch module."""
    fc1_w, fc1_b, fc2_w, fc2_b = raw_params
    combined = jnp.concatenate([article_emb, question_emb], axis=-1)
    x = jnp.maximum(combined @ fc1_w.T + fc1_b, 0.0)
    return x @ fc2_w.T + fc2_b


# ----------------------------------------------------------------------------
# Self-test
# ----------------------------------------------------------------------------
if __name__ == "__main__":
    # Small shapes consistent with the module: emb dim per stream = 128 so
    # input_dim = 256; hidden = 32; 4 answer options; batch = 64 so the
    # two-tile small-batch path (TB=32, grid=(2,)) is exercised.
    B, E, H, O = 64, 128, 32, 4

    key = jax.random.PRNGKey(0)
    k_a, k_q, k_o, k_p = jax.random.split(key, 4)

    article_emb = jax.random.normal(k_a, (B, E), jnp.float32)
    question_emb = jax.random.normal(k_q, (B, E), jnp.float32)
    options_emb = jax.random.normal(k_o, (B, O, E), jnp.float32)  # unused by forward

    raw_params = init_params(k_p, E, H, O)
    prepped = prepare_params(*raw_params, emb_dim=E)   # one-time prep

    logits = qa_model_forward(article_emb, question_emb, options_emb, prepped)
    logits = jax.block_until_ready(logits)
    assert logits.shape == (B, O)

    # Tight check against the bf16-quantized reference (same operand rounding,
    # f32 accumulation) and a loose check against the full-f32 reference.
    ref_q = reference_forward_bf16(article_emb, question_emb, raw_params, E)
    assert jnp.allclose(logits, ref_q, atol=1e-3, rtol=1e-3), "mismatch vs bf16 reference"

    ref_f = reference_forward_f32(article_emb, question_emb, raw_params)
    assert jnp.allclose(logits, ref_f, atol=5e-2, rtol=5e-2), "mismatch vs f32 reference"

    print("KERNEL_OK")
</pallas_src>

<mosaic_0001>
module attributes {stable_mosaic.version = 11 : i64} {
  func.func @qa_kernel(%arg0: i32, %arg1: memref<32x128xf32, #tpu.memory_space<vmem>>, %arg2: memref<32x128xf32, #tpu.memory_space<vmem>>, %arg3: memref<128x128xbf16, #tpu.memory_space<vmem>>, %arg4: memref<128x128xbf16, #tpu.memory_space<vmem>>, %arg5: memref<1x128xf32, #tpu.memory_space<vmem>>, %arg6: memref<128x128xbf16, #tpu.memory_space<vmem>>, %arg7: memref<1x128xf32, #tpu.memory_space<vmem>>, %arg8: memref<32x4xf32, #tpu.memory_space<vmem>>) attributes {dimension_semantics = [#tpu.dimension_semantics<parallel>], iteration_bounds = array<i64: 2>, scalar_prefetch = 0 : i64, scratch_operands = 0 : i64, tpu.core_type = #tpu.core_type<tc>, window_params = [{transform_indices = @transform_0, window_bounds = array<i64: 32, 128>}, {transform_indices = @transform_1, window_bounds = array<i64: 32, 128>}, {pipeline_mode = #tpu.pipeline_mode<synchronous>, transform_indices = @transform_2, window_bounds = array<i64: 128, 128>}, {pipeline_mode = #tpu.pipeline_mode<synchronous>, transform_indices = @transform_3, window_bounds = array<i64: 128, 128>}, {pipeline_mode = #tpu.pipeline_mode<synchronous>, transform_indices = @transform_4, window_bounds = array<i64: 1, 128>}, {pipeline_mode = #tpu.pipeline_mode<synchronous>, transform_indices = @transform_5, window_bounds = array<i64: 128, 128>}, {pipeline_mode = #tpu.pipeline_mode<synchronous>, transform_indices = @transform_6, window_bounds = array<i64: 1, 128>}, {transform_indices = @transform_7, window_bounds = array<i64: 32, 4>}]} {
    %c0 = arith.constant 0 : index
    %c0_0 = arith.constant 0 : index
    %0 = vector.load %arg1[%c0, %c0_0] : memref<32x128xf32, #tpu.memory_space<vmem>>, vector<32x128xf32>
    %1 = arith.truncf %0 : vector<32x128xf32> to vector<32x128xbf16>
    %c0_1 = arith.constant 0 : index
    %c0_2 = arith.constant 0 : index
    %2 = vector.load %arg2[%c0_1, %c0_2] : memref<32x128xf32, #tpu.memory_space<vmem>>, vector<32x128xf32>
    %3 = arith.truncf %2 : vector<32x128xf32> to vector<32x128xbf16>
    %c0_3 = arith.constant 0 : index
    %c0_4 = arith.constant 0 : index
    %4 = vector.load %arg3[%c0_3, %c0_4] : memref<128x128xbf16, #tpu.memory_space<vmem>>, vector<128x128xbf16>
    %cst = arith.constant dense<0.000000e+00> : vector<32x128xf32>
    %5 = tpu.matmul %1, %4, %cst {dimension_numbers = #tpu.dot_dimension_numbers<[1], [0], [0], [1], [0, 0, 1, 1], [], []>} : vector<32x128xbf16>, vector<128x128xbf16>, vector<32x128xf32> -> vector<32x128xf32>
    %c0_5 = arith.constant 0 : index
    %c0_6 = arith.constant 0 : index
    %6 = vector.load %arg4[%c0_5, %c0_6] : memref<128x128xbf16, #tpu.memory_space<vmem>>, vector<128x128xbf16>
    %cst_7 = arith.constant dense<0.000000e+00> : vector<32x128xf32>
    %7 = tpu.matmul %3, %6, %cst_7 {dimension_numbers = #tpu.dot_dimension_numbers<[1], [0], [0], [1], [0, 0, 1, 1], [], []>} : vector<32x128xbf16>, vector<128x128xbf16>, vector<32x128xf32> -> vector<32x128xf32>
    %8 = arith.addf %5, %7 : vector<32x128xf32>
    %c0_8 = arith.constant 0 : index
    %c0_9 = arith.constant 0 : index
    %9 = vector.load %arg5[%c0_8, %c0_9] : memref<1x128xf32, #tpu.memory_space<vmem>>, vector<1x128xf32>
    %10 = vector.broadcast %9 : vector<1x128xf32> to vector<32x128xf32>
    %11 = arith.addf %8, %10 : vector<32x128xf32>
    %cst_10 = arith.constant 0.000000e+00 : f32
    %12 = vector.broadcast %cst_10 : f32 to vector<32x128xf32>
    %13 = arith.maximumf %11, %12 : vector<32x128xf32>
    %14 = arith.truncf %13 : vector<32x128xf32> to vector<32x128xbf16>
    %c0_11 = arith.constant 0 : index
    %c0_12 = arith.constant 0 : index
    %15 = vector.load %arg6[%c0_11, %c0_12] : memref<128x128xbf16, #tpu.memory_space<vmem>>, vector<128x128xbf16>
    %cst_13 = arith.constant dense<0.000000e+00> : vector<32x128xf32>
    %16 = tpu.matmul %14, %15, %cst_13 {dimension_numbers = #tpu.dot_dimension_numbers<[1], [0], [0], [1], [0, 0, 1, 1], [], []>} : vector<32x128xbf16>, vector<128x128xbf16>, vector<32x128xf32> -> vector<32x128xf32>
    %c0_14 = arith.constant 0 : index
    %c0_15 = arith.constant 0 : index
    %17 = vector.load %arg7[%c0_14, %c0_15] : memref<1x128xf32, #tpu.memory_space<vmem>>, vector<1x128xf32>
    %18 = vector.broadcast %17 : vector<1x128xf32> to vector<32x128xf32>
    %19 = arith.addf %16, %18 : vector<32x128xf32>
    %20 = vector.extract_strided_slice %19 {offsets = [0, 0], sizes = [32, 4], strides = [1, 1]} : vector<32x128xf32> to vector<32x4xf32>
    %c0_16 = arith.constant 0 : index
    %c0_17 = arith.constant 0 : index
    %21 = vector.load %arg8[%c0_16, %c0_17] : memref<32x4xf32, #tpu.memory_space<vmem>>, vector<32x4xf32>
    tpu.vector_store %arg8[%c0_16, %c0_17], %20 {strides = array<i32>} : memref<32x4xf32, #tpu.memory_space<vmem>>, vector<32x4xf32>,
    return
  }
  func.func @transform_0(%arg0: i32) -> (i32, i32) {
    %c0_i32 = arith.constant 0 : i32
    %c0_i32_0 = arith.constant 0 : i32
    return %arg0, %c0_i32 : i32, i32
  }
  func.func @transform_1(%arg0: i32) -> (i32, i32) {
    %c0_i32 = arith.constant 0 : i32
    %c0_i32_0 = arith.constant 0 : i32
    return %arg0, %c0_i32 : i32, i32
  }
  func.func @transform_2(%arg0: i32) -> (i32, i32) {
    %c0_i32 = arith.constant 0 : i32
    %c0_i32_0 = arith.constant 0 : i32
    %c0_i32_1 = arith.constant 0 : i32
    return %c0_i32, %c0_i32_0 : i32, i32
  }
  func.func @transform_3(%arg0: i32) -> (i32, i32) {
    %c0_i32 = arith.constant 0 : i32
    %c0_i32_0 = arith.constant 0 : i32
    %c0_i32_1 = arith.constant 0 : i32
    return %c0_i32, %c0_i32_0 : i32, i32
  }
  func.func @transform_4(%arg0: i32) -> (i32, i32) {
    %c0_i32 = arith.constant 0 : i32
    %c0_i32_0 = arith.constant 0 : i32
    %c0_i32_1 = arith.constant 0 : i32
    return %c0_i32, %c0_i32_0 : i32, i32
  }
  func.func @transform_5(%arg0: i32) -> (i32, i32) {
    %c0_i32 = arith.constant 0 : i32
    %c0_i32_0 = arith.constant 0 : i32
    %c0_i32_1 = arith.constant 0 : i32
    return %c0_i32, %c0_i32_0 : i32, i32
  }
  func.func @transform_6(%arg0: i32) -> (i32, i32) {
    %c0_i32 = arith.constant 0 : i32
    %c0_i32_0 = arith.constant 0 : i32
    %c0_i32_1 = arith.constant 0 : i32
    return %c0_i32, %c0_i32_0 : i32, i32
  }
  func.func @transform_7(%arg0: i32) -> (i32, i32) {
    %c0_i32 = arith.constant 0 : i32
    %c0_i32_0 = arith.constant 0 : i32
    return %arg0, %c0_i32 : i32, i32
  }
}

</mosaic_0001>

<bundles_post_ra>
// kernel: tpu_custom_call.1
= control target key start
LH: loop header
LB: loop body
LE: loop exit
PB: predicated region body
PF: predicated region fallthrough
CT: control target
= control target key end

     0   :  { %s1659_s0 = inlined_call_operand.hbm [shape: f32[64,128], index: 0, kind: input, shape index: {}]   ;;  %s1660_s1 = inlined_call_operand.hbm [shape: f32[64,128], index: 1, kind: input, shape index: {}]   ;;  %s1661_s2 = inlined_call_operand.hbm [shape: bf16[128,128], index: 2, kind: input, shape index: {}]   ;;  %s1662_s3 = inlined_call_operand.hbm [shape: bf16[128,128], index: 3, kind: input, shape index: {}]   ;;  %s1663_s4 = inlined_call_operand.vmem [shape: f32[1,128], index: 4, kind: input, shape index: {}]   ;;  %s1664_s5 = inlined_call_operand.hbm [shape: bf16[128,128], index: 5, kind: input, shape index: {}]   ;;  %s1665_s6 = inlined_call_operand.vmem [shape: f32[1,128], index: 6, kind: input, shape index: {}]   ;;  %s1666_s7 = inlined_call_operand.vmem [shape: f32[64,4], index: 7, kind: output, shape index: {}]  }
   0x1   :  { %1670 = sst [smem:[#allocation14_spill]] %s1659_s0 }
   0x2   :  { %12 = vsyncpa [#allocation3], 0 }
   0x3   :  { %14 = vsyncpa [#allocation3 + $0x1], 0 }
   0x4   :  { %15 = vsyncpa [#allocation5], 0 }
   0x5   :  { %17 = vsyncpa [#allocation5 + $0x1], 0 }
   0x6   :  { %18 = vsyncpa [#allocation8], 0  ;;  %s1373_s24 = smov 0   ;;  %s1375_s25 = smov 0  }
   0x7   :  { %s1377_s26 = smov 0   ;;  %s1379_s27 = smov 0  }
   0x8 LB: > { %s1392_s28 = sadd.s32 4294967295, %s1322_s27   ;;  %p44_p0 = scmp.ne.s32.totalorder %s1314_s25, %s1310_s24  ;;  %s1322_s27 = sphi %s1379_s27, %s1686_s27   ;;  %s1318_s26 = sphi %s1377_s26, %s1685_s26   ;;  %s1314_s25 = sphi %s1375_s25, %s1684_s25   ;;  %s1310_s24 = sphi %s1373_s24, %s1683_s24  }
   0x9   : > { %p1667_p1 = scmp.eq.s32.totalorder %s1392_s28, 0  ;;  %p886_p2 = scmp.ge.s32.totalorder %s1322_s27, 1 }
   0xa   : > { %p212_p3 = scmp.lt.s32.totalorder %s1322_s27, 3  ;;  %s1324_s8 = smov [#allocation6]  }
   0xb   : > { %p1400_p4 = por %p1667_p1, %p44_p0  ;;  %s224_s9 = sshll.u32 %s1324_s8, 4  ;;  %s1408_s9 = int_to_ptr.vmem [resolvable:$true] %s224_s9 }
   0xc   : > { %p1404_p5 = pnand %p886_p2, %p212_p3  ;;  %s1325_s11 = smov [#allocation7]  }
   0xd   : > { %s1671_s29 = scalar_select %p1400_p4, 1, 0 }
   0xe   : > { %s1672_s30 = scalar_select %p1404_p5, 1, 0 }
   0xf   : > { %p1045_p6 = pneg %p1404_p5  ;;  %s237_s12 = sshll.u32 %s1325_s11, 4  ;;  %s1418_s12 = int_to_ptr.vmem [resolvable:$true] %s237_s12 }
  0x10   : > { %s1326_s13 = smov [#allocation9]   ;;  %s1132_s17 = scalar_lea.hbm %s1661_s2, 1024 }
  0x11   : > { %p1414_p7 = pnand %p1045_p6, %p1667_p1  ;;  %s1420_s14 = sshll.u32 %s1326_s13, 4  ;;  %s254_s14 = int_to_ptr.vmem [resolvable:$true] %s1420_s14 }
  0x12   : > { %p1133_p8 = scmp.ne.s32.totalorder %s1661_s2, %s1132_s17  ;;  %p1139_p12 = scmp.lt.u32.totalorder %s1132_s17, %s1661_s2 }
  0x13   : > { %p1430_p9 = pneg %p1414_p7 }
  0x15   : > { %p1135_p10 = pnand %p1430_p9, %p1133_p8 }
  0x17   : > { %p1136_p11 = pneg %p1135_p10 }
  0x19   : > { %p1141_p13 = pnand %p1139_p12, %p1136_p11 }
  0x1b   : > { %1144 = shalt.err (!%p1141_p13)
}
  0x1c   : > { %s1145_s23 = scalar_lea.vmem %s1408_s9, 1024  ;;  %p1153_p6 = scmp.lt.s32.totalorder %s1408_s9, %s1408_s9 }
  0x1d   : > { %p1146_p0 = scmp.ne.s32.totalorder %s1408_s9, %s1145_s23  ;;  %p1154_p1 = scmp.lt.s32.totalorder %s1145_s23, %s1145_s23 }
  0x1f   : > { %p1148_p2 = pnand %p1146_p0, %p1430_p9  ;;  %p1155_p8 = por %p1154_p1, %p1153_p6 }
  0x21   : > { %p1149_p3 = pneg %p1148_p2 }
  0x23   : > { %p1156_p10 = pnand %p1155_p8, %p1149_p3 }
  0x25   : > { %1159 = shalt.err (!%p1156_p10)
}
  0x26   : > { %s1327_s24 = smov 64   ;;  %s1328_s8 = smov 4  }
  0x27   : > { %1048 = dma.hbm_to_vmem [thread:$0]  (!%p1414_p7), %s1661_s2, 1024, %s1408_s9, [#allocation5], %s1327_s24, %s1327_s24, %s1328_s8  }
  0x28   : > { %s1160_s17 = scalar_lea.hbm %s1662_s3, 1024 }
  0x29   : > { %p1161_p1 = scmp.ne.s32.totalorder %s1662_s3, %s1160_s17  ;;  %p1167_p13 = scmp.lt.u32.totalorder %s1160_s17, %s1662_s3 }
  0x2b   : > { %p1163_p11 = pnand %p1161_p1, %p1430_p9 }
  0x2d   : > { %p1164_p12 = pneg %p1163_p11 }
  0x2f   : > { %p1169_p0 = pnand %p1167_p13, %p1164_p12 }
  0x31   : > { %1172 = shalt.err (!%p1169_p0)
}
  0x32   : > { %s1173_s9 = scalar_lea.vmem %s1418_s12, 1024  ;;  %p1181_p8 = scmp.lt.s32.totalorder %s1418_s12, %s1418_s12 }
  0x33   : > { %p1174_p2 = scmp.ne.s32.totalorder %s1418_s12, %s1173_s9  ;;  %p1182_p10 = scmp.lt.s32.totalorder %s1173_s9, %s1173_s9 }
  0x35   : > { %p1176_p3 = pnand %p1174_p2, %p1430_p9  ;;  %p1183_p1 = por %p1182_p10, %p1181_p8 }
  0x37   : > { %p1177_p6 = pneg %p1176_p3 }
  0x39   : > { %p1184_p11 = pnand %p1183_p1, %p1177_p6 }
  0x3b   : > { %1187 = shalt.err (!%p1184_p11)
}
  0x3c   : > { %1051 = dma.hbm_to_vmem [thread:$0]  (!%p1414_p7), %s1662_s3, 1024, %s1418_s12, [#allocation8], %s1327_s24, %s1327_s24, %s1328_s8  }
  0x3d   : > { %s1188_s16 = scalar_lea.hbm %s1664_s5, 1024 }
  0x3e   : > { %p1189_p12 = scmp.ne.s32.totalorder %s1664_s5, %s1188_s16  ;;  %p1195_p2 = scmp.lt.u32.totalorder %s1188_s16, %s1664_s5 }
  0x40   : > { %p1191_p13 = pnand %p1189_p12, %p1430_p9 }
  0x42   : > { %p1192_p0 = pneg %p1191_p13 }
  0x44   : > { %p1197_p3 = pnand %p1195_p2, %p1192_p0 }
  0x46   : > { %1200 = shalt.err (!%p1197_p3)
}
  0x47   : > { %s1201_s22 = scalar_lea.vmem %s254_s14, 1024  ;;  %p1209_p1 = scmp.lt.s32.totalorder %s254_s14, %s254_s14 }
  0x48   : > { %p1202_p6 = scmp.ne.s32.totalorder %s254_s14, %s1201_s22  ;;  %p1210_p11 = scmp.lt.s32.totalorder %s1201_s22, %s1201_s22 }
  0x4a   : > { %p1204_p8 = pnand %p1202_p6, %p1430_p9  ;;  %p1211_p4 = por %p1210_p11, %p1209_p1 }
  0x4c   : > { %p1205_p10 = pneg %p1204_p8 }
  0x4e   : > { %p1212_p5 = pnand %p1211_p4, %p1205_p10 }
  0x50   : > { %1215 = shalt.err (!%p1212_p5)
}
  0x51   : > { %1054 = dma.hbm_to_vmem [thread:$0]  (!%p1414_p7), %s1664_s5, 1024, %s254_s14, [#allocation8], %s1327_s24, %s1327_s24, %s1328_s8  }
  0x52   : > { %s1503_s20 = sadd.s32 1, %s1322_s27   ;;  %s31_s23 = sadd.s32 1, %s1318_s26 }
  0x53   : > { %s28_s10 = ssub.s32 %s1322_s27, %s1503_s20  ;;  %p38_p5 = scmp.ne.s32.totalorder %s1318_s26, %s1314_s25 }
  0x54   : > { %p29_p4 = scmp.eq.s32.totalorder %s28_s10, 0  ;;  %p39_p9 = scmp.eq.s32.totalorder %s1322_s27, 0 }
  0x55   : > { %p1065_p12 = scmp.lt.s32.totalorder %s1322_s27, 2  ;;  %s270_s13 = sand.u32 1, %s1318_s26  }
  0x56   : > { %s1513_s11 = scalar_select %p29_p4, %s1318_s26, %s31_s23  }
  0x57   : > { %p40_p13 = por %p39_p9, %p38_p5  ;;  %s1516_s15 = sshll.u32 %s270_s13, 5 }
  0x58   : > { %s933_s16 = sshll.u32 %s1322_s27, 9  ;;  %s1675_s0 = sld [smem:[#allocation14_spill]] }
  0x59   : > { %s274_s8 = scalar_lea.vmem [#allocation2], %s1516_s15  ;;  %p1529_p7 = pnand %p1065_p12, %p40_p13 }
  0x5a   : > { %s281_s18 = sshll.u32 %s274_s8, 4  ;;  %s1533_s21 = scalar_lea.sflag [#allocation3], %s270_s13  ;;  %s1527_s18 = int_to_ptr.vmem [resolvable:$true] %s281_s18 }
  0x5b   : > { %p1218_p2 = pneg %p1529_p7 }
  0x5e   : > { %s1524_s24 = scalar_lea.hbm %s1675_s0, %s933_s16  ;;  %s1221_s10 = scalar_lea.hbm %s1675_s0, 1024 }
  0x5f   : > { %s1216_s22 = scalar_lea.hbm %s1524_s24, 512  ;;  %p1222_p8 = scmp.lt.u32.totalorder %s1524_s24, %s1675_s0 }
  0x60   : > { %p1217_p0 = scmp.ne.s32.totalorder %s1524_s24, %s1216_s22  ;;  %p1223_p10 = scmp.lt.u32.totalorder %s1221_s10, %s1216_s22 }
  0x61   : > { %p1225_p11 = scmp.lt.u32.totalorder %s1216_s22, %s1524_s24 }
  0x62   : > { %p1219_p3 = pnand %p1218_p2, %p1217_p0  ;;  %p1224_p1 = por %p1223_p10, %p1222_p8 }
  0x64   : > { %p1220_p6 = pneg %p1219_p3  ;;  %p1226_p4 = por %p1225_p11, %p1224_p1 }
  0x66   : > { %p1227_p5 = pnand %p1226_p4, %p1220_p6 }
  0x68   : > { %1230 = shalt.err (!%p1227_p5)
}
  0x69   : > { %s1231_s13 = scalar_lea.vmem %s1527_s18, 512  ;;  %s1329_s14 = smov [#allocation2]  }
  0x6a   : > { %p1232_p9 = scmp.ne.s32.totalorder %s1527_s18, %s1231_s13  ;;  %s1236_s8 = sshll.u32 %s1329_s14, 4  ;;  %s1237_s8 = int_to_ptr.vmem [resolvable:$false] %s1236_s8 }
  0x6b   : > { %s1238_s12 = scalar_lea.vmem %s1237_s8, 1024  ;;  %p1239_p0 = scmp.lt.s32.totalorder %s1527_s18, %s1237_s8 }
  0x6c   : > { %p1234_p12 = pnand %p1232_p9, %p1218_p2  ;;  %p1240_p3 = scmp.lt.s32.totalorder %s1238_s12, %s1231_s13 }
  0x6e   : > { %p1235_p13 = pneg %p1234_p12  ;;  %p1241_p8 = por %p1240_p3, %p1239_p0 }
  0x70   : > { %p1242_p10 = pnand %p1241_p8, %p1235_p13 }
  0x72   : > { %1245 = shalt.err (!%p1242_p10)
}
  0x73   : > { %s1330_s22 = smov 128   ;;  %s1331_s9 = smov 8  }
  0x74   : > { %1058 = dma.hbm_to_vmem [thread:$0]  (!%p1529_p7), %s1524_s24, 512, %s1527_s18, %s1533_s21, %s1330_s22, %s1330_s22, %s1331_s9  }
  0x75   : > { %s1569_s17 = scalar_lea.hbm %s1660_s1, %s933_s16  ;;  %s295_s13 = scalar_lea.vmem [#allocation4], %s1516_s15 }
  0x76   : > { %s302_s14 = sshll.u32 %s295_s13, 4  ;;  %s291_s8 = sand.u32 1, %s1322_s27   ;;  %s1572_s14 = int_to_ptr.vmem [resolvable:$true] %s302_s14 }
  0x77   : > { %s1575_s12 = scalar_lea.sflag [#allocation5], %s291_s8  ;;  %s1246_s0 = scalar_lea.hbm %s1569_s17, 512 }
  0x78   : > { %p1247_p6 = scmp.ne.s32.totalorder %s1569_s17, %s1246_s0  ;;  %s1251_s18 = scalar_lea.hbm %s1660_s1, 1024 }
  0x79   : > { %p1252_p4 = scmp.lt.u32.totalorder %s1569_s17, %s1660_s1  ;;  %p1253_p5 = scmp.lt.u32.totalorder %s1251_s18, %s1246_s0 }
  0x7a   : > { %p1249_p1 = pnand %p1247_p6, %p1218_p2  ;;  %p1255_p12 = scmp.lt.u32.totalorder %s1246_s0, %s1569_s17 }
  0x7b   : > { %p1254_p9 = por %p1253_p5, %p1252_p4 }
  0x7c   : > { %p1250_p11 = pneg %p1249_p1 }
  0x7d   : > { %p1256_p13 = por %p1255_p12, %p1254_p9 }
  0x7f   : > { %p1257_p0 = pnand %p1256_p13, %p1250_p11 }
  0x81   : > { %1260 = shalt.err (!%p1257_p0)
}
  0x82   : > { %s1261_s27 = scalar_lea.vmem %s1572_s14, 512  ;;  %s1332_s15 = smov [#allocation4]  }
  0x83   : > { %p1262_p3 = scmp.ne.s32.totalorder %s1572_s14, %s1261_s27  ;;  %s1266_s23 = sshll.u32 %s1332_s15, 4  ;;  %s1267_s23 = int_to_ptr.vmem [resolvable:$false] %s1266_s23 }
  0x84   : > { %s1268_s13 = scalar_lea.vmem %s1267_s23, 1024  ;;  %p1269_p6 = scmp.lt.s32.totalorder %s1572_s14, %s1267_s23 }
  0x85   : > { %p1264_p8 = pnand %p1262_p3, %p1218_p2  ;;  %p1270_p1 = scmp.lt.s32.totalorder %s1268_s13, %s1261_s27 }
  0x87   : > { %p1265_p10 = pneg %p1264_p8  ;;  %p1271_p4 = por %p1270_p1, %p1269_p6 }
  0x89   : > { %p1272_p5 = pnand %p1271_p4, %p1265_p10 }
  0x8b   : > { %1275 = shalt.err (!%p1272_p5)
}
  0x8c   : > { %1061 = dma.hbm_to_vmem [thread:$0]  (!%p1529_p7), %s1569_s17, 512, %s1572_s14, %s1575_s12, %s1330_s22, %s1330_s22, %s1331_s9  }
  0x8d   : > { %p1677_p2 = scmp.ne.s32.totalorder %s1672_s30, 0 }
  0x8e   : > { %s316_s0 = sand.u32 (!%p1677_p2), 1, %s1314_s25   ;;  %p1678_p11 = scmp.ne.s32.totalorder (!%p1677_p2), %s1671_s29, 0 }
  0x8f   : > { %314 = sbr.rel (%p1677_p2) target bundleno = 665 (0x299), region = 48  ;;  %s898_s8 = sshll.u32 (!%p1677_p2), %s316_s0, 5 }
  0x90   : > { %s317_s24 = scalar_lea.sflag (!%p1677_p2), [#allocation3], %s316_s0  ;;  %s1607_s16 = scalar_lea.vmem (!%p1677_p2), [#allocation2], %s898_s8 }
  0x96   : > { %1293 = dma.done.wait (%p1678_p11), %s317_s24, 512  }
  0x97   : > { %1295 = vsyncadd (%p1678_p11), %s317_s24, 4294966784  ;;  %s325_s19 = sand.u32 1, %s1392_s28   ;;  %s1614_s22 = scalar_lea.vmem [#allocation4], %s898_s8 }
  0x98   : > { %s326_s18 = scalar_lea.sflag [#allocation5], %s325_s19 }
  0x99   : > { %1297 = dma.done.wait (%p1678_p11), %s326_s18, 512  }
  0x9a   : > { %1299 = vsyncadd (%p1678_p11), %s326_s18, 4294966784  ;;  %p1679_p7 = scmp.eq.s32.totalorder %s1392_s28, 0 }
  0x9c   : > { %1301 = dma.done.wait (%p1679_p7), [#allocation5], 1024   ;;  %p1680_p9 = pmov %p1679_p7 }
  0x9d   : > { %p1681_p12 = pmov %p1679_p7 }
  0x9e   : > { %1303 = vsyncadd (%p1680_p9), [#allocation5], 4294966272 }
  0x9f   : > { %1305 = dma.done.wait (%p1681_p12), [#allocation8], 2048   ;;  %p1682_p13 = pmov %p1679_p7 }
  0xa0   : > { %v1108_v0 = vld [vmem:[#allocation7] sm:$0xff]   ;;  %v1109_v1 = vld [vmem:[#allocation7 + $0x8] sm:$0xff]   ;;  %v1110_v2 = vld [vmem:[#allocation7 + $0x10] sm:$0xff]   ;;  %s903_s9 = sshll.u32 %s1392_s28, 2  ;;  %vm761_vm0 = vcmask 31744  }
  0xa1   : > { %1307 = vsyncadd (%p1682_p13), [#allocation8], 4294965248  ;;  %965 = vmatprep.subr.bf16.mxu0 %v1108_v0  ;;  %v1111_v3 = vld [vmem:[#allocation7 + $0x18] sm:$0xff]   ;;  %v392_v4 = vld [vmem:[%s1614_s22] sm:$0xff]  ;;  %p380_p0 = scmp.lt.s32.totalorder %s903_s9, 7 }
  0xa2   : > { %966 = vmatpush3.bf16.msra.mxu0 %v1108_v0  ;;  %v393_v5 = vld [vmem:[%s1614_s22 + $0x8] sm:$0xff]  ;;  %v1112_v7 = vld [vmem:[#allocation7 + $0x20] sm:$0xff]   ;;  %v1114_v9 = vld [vmem:[#allocation7 + $0x30] sm:$0xff]  }
  0xa3   : > { %967 = vmatprep.subr.bf16.mxu0 %v1109_v1  ;;  %v396_v6 = vpack.c.bf16 %v393_v5, %v392_v4  ;;  %v1113_v8 = vld [vmem:[#allocation7 + $0x28] sm:$0xff]   ;;  %v1124_v10 = vld [vmem:[#allocation9] sm:$0xff]   ;;  %v1126_v12 = vld [vmem:[#allocation9 + $0x10] sm:$0xff]   ;;  %s1688_s9 = smov (!%p380_p0, %s903_s9), 7 }
  0xa4   : > { %v1125_v11 = vld [vmem:[#allocation9 + $0x8] sm:$0xff]   ;;  %1005 = vmatprep.subr.bf16.mxu1 %v1124_v10  ;;  %v1115_v13 = vld [vmem:[#allocation7 + $0x38] sm:$0xff]   ;;  %v394_v14 = vld [vmem:[%s1614_s22 + $0x10] sm:$0xff]  ;;  %s904_s17 = sshll.u32 %s1688_s9, 3 }
  0xa5   : > { %981 = vmatprep.mubr.bf16.mxu0 %v396_v6  ;;  %1006 = vmatpush3.bf16.msra.mxu1 %v1124_v10  ;;  %v395_v15 = vld [vmem:[%s1614_s22 + $0x18] sm:$0xff]  ;;  %v1116_v17 = vld [vmem:[#allocation6] sm:$0xff]   ;;  %v387_v19 = vld [vmem:[%s1607_s16 + $0x8] sm:$0xff]  ;;  %s383_s27 = scalar_lea.vmem %s1666_s7, %s904_s17 }
  0xa6   : > { %968 = vmatpush3.bf16.msra.mxu0 %v1109_v1  ;;  %1007 = vmatprep.subr.bf16.mxu1 %v1125_v11  ;;  %v1127_v16 = vld [vmem:[#allocation9 + $0x18] sm:$0xff]   ;;  %v386_v18 = vld [vmem:[%s1607_s16] sm:$0xff]  ;;  %v397_v20 = vpack.c.bf16 %v395_v15, %v394_v14  ;;  %v1117_v22 = vld [vmem:[#allocation6 + $0x8] sm:$0xff]  }
  0xa7   : > { %969 = vmatprep.subr.bf16.mxu0 %v1110_v2  ;;  %v390_v21 = vpack.c.bf16 %v387_v19, %v386_v18  ;;  %v1128_v23 = vld [vmem:[#allocation9 + $0x20] sm:$0xff]   ;;  %v1129_v24 = vld [vmem:[#allocation9 + $0x28] sm:$0xff]   ;;  %v1118_v25 = vld [vmem:[#allocation6 + $0x10] sm:$0xff]  }
  0xa8   : > { %v1119_v26 = vld [vmem:[#allocation6 + $0x18] sm:$0xff]   ;;  %v1120_v27 = vld [vmem:[#allocation6 + $0x20] sm:$0xff]   ;;  %v1121_v28 = vld [vmem:[#allocation6 + $0x28] sm:$0xff]  }
  0xa9   : > { %1008 = vmatpush3.bf16.msra.mxu1 %v1125_v11  ;;  %v1122_v29 = vld [vmem:[#allocation6 + $0x30] sm:$0xff]   ;;  %v1123_v30 = vld [vmem:[#allocation6 + $0x38] sm:$0xff]   ;;  %v921_v36 = vld [vmem:[%s1663_s4] ss:$0 sm:$0xff] }
  0xaa   : > { %970 = vmatpush3.bf16.msra.mxu0 %v1110_v2  ;;  %1009 = vmatprep.subr.bf16.mxu1 %v1126_v12  ;;  %v388_v31 = vld [vmem:[%s1607_s16 + $0x10] sm:$0xff]  ;;  %v389_v32 = vld [vmem:[%s1607_s16 + $0x18] sm:$0xff]  ;;  %v922_v51 = vld [vmem:[%s1665_s6] ss:$0 sm:$0xff] }
  0xab   : > { %971 = vmatprep.subr.bf16.mxu0 %v1111_v3  ;;  %v391_v33 = vpack.c.bf16 %v389_v32, %v388_v31  ;;  %v1130_v34 = vld [vmem:[#allocation9 + $0x30] sm:$0xff]   ;;  %v1131_v35 = vld [vmem:[#allocation9 + $0x38] sm:$0xff]  }
  0xad   : > { %1010 = vmatpush3.bf16.msra.mxu1 %v1126_v12 }
  0xae   : > { %972 = vmatpush3.bf16.msra.mxu0 %v1111_v3  ;;  %1011 = vmatprep.subr.bf16.mxu1 %v1127_v16 }
  0xaf   : > { %973 = vmatprep.subr.bf16.mxu0 %v1112_v7 }
  0xb1   : > { %1012 = vmatpush3.bf16.msra.mxu1 %v1127_v16 }
  0xb2   : > { %974 = vmatpush3.bf16.msra.mxu0 %v1112_v7  ;;  %1013 = vmatprep.subr.bf16.mxu1 %v1128_v23 }
  0xb3   : > { %975 = vmatprep.subr.bf16.mxu0 %v1113_v8 }
  0xb5   : > { %1014 = vmatpush3.bf16.msra.mxu1 %v1128_v23 }
  0xb6   : > { %976 = vmatpush3.bf16.msra.mxu0 %v1113_v8  ;;  %1015 = vmatprep.subr.bf16.mxu1 %v1129_v24 }
  0xb7   : > { %977 = vmatprep.subr.bf16.mxu0 %v1114_v9 }
  0xb9   : > { %1016 = vmatpush3.bf16.msra.mxu1 %v1129_v24 }
  0xba   : > { %978 = vmatpush3.bf16.msra.mxu0 %v1114_v9  ;;  %1017 = vmatprep.subr.bf16.mxu1 %v1130_v34 }
  0xbb   : > { %979 = vmatprep.subr.bf16.mxu0 %v1115_v13 }
  0xbd   : > { %1018 = vmatpush3.bf16.msra.mxu1 %v1130_v34 }
  0xbe   : > { %980 = vmatpush3.bf16.msra.mxu0 %v1115_v13  ;;  %1019 = vmatprep.subr.bf16.mxu1 %v1131_v35 }
  0xbf   : > { %985 = vmatprep.subr.bf16.mxu0 %v1116_v17 }
  0xc1   : > { %982 = vmatmul.mubr.bf16.vlgmr.msra.gmra.mrb[0].mxu0 %v397_v20  ;;  %1020 = vmatpush3.bf16.msra.mxu1 %v1131_v35 }
  0xc2   : > { %986 = vmatpush3.bf16.msra.mxu0 %v1116_v17  ;;  %1001 = vmatprep.mubr.bf16.mxu0 %v390_v21 }
  0xc3   : > { %987 = vmatprep.subr.bf16.mxu0 %v1117_v22 }
  0xc6   : > { %988 = vmatpush3.bf16.msra.mxu0 %v1117_v22 }
  0xc7   : > { %989 = vmatprep.subr.bf16.mxu0 %v1118_v25 }
  0xca   : > { %990 = vmatpush3.bf16.msra.mxu0 %v1118_v25 }
  0xcb   : > { %991 = vmatprep.subr.bf16.mxu0 %v1119_v26 }
  0xce   : > { %992 = vmatpush3.bf16.msra.mxu0 %v1119_v26 }
  0xcf   : > { %993 = vmatprep.subr.bf16.mxu0 %v1120_v27 }
  0xd2   : > { %994 = vmatpush3.bf16.msra.mxu0 %v1120_v27 }
  0xd3   : > { %995 = vmatprep.subr.bf16.mxu0 %v1121_v28 }
  0xd6   : > { %996 = vmatpush3.bf16.msra.mxu0 %v1121_v28 }
  0xd7   : > { %997 = vmatprep.subr.bf16.mxu0 %v1122_v29 }
  0xda   : > { %998 = vmatpush3.bf16.msra.mxu0 %v1122_v29 }
  0xdb   : > { %999 = vmatprep.subr.bf16.mxu0 %v1123_v30 }
  0xde   : > { %1000 = vmatpush3.bf16.msra.mxu0 %v1123_v30 }
  0xe1   : > { %1002 = vmatmul.mubr.bf16.vlgmr.msra.gmra.mrb[0].mxu0 %v391_v33 }
 0x1b4   : > { %v1003_v37 = vpop.f32.mrb[0].mxu0 }
 0x1b5   : > { %v633_v38 = vadd.f32 %v1003_v37, %v921_v36  ;;  %v609_v39 = vpop.f32.mrb[1].mxu0 }
 0x1b6   : > { %v631_v40 = vadd.f32 %v921_v36, %v609_v39  ;;  %v1004_v41 = vpop.f32.mrb[2].mxu0 }
 0x1b7   : > { %v634_v42 = vadd.f32 %v1004_v41, %v921_v36  ;;  %v612_v43 = vpop.f32.mrb[3].mxu0  ;;  %v637_v45 = vmax.f32 %v633_v38, 0.0 }
 0x1b8   : > { %v632_v44 = vadd.f32 %v921_v36, %v612_v43  ;;  %v635_v47 = vmax.f32 %v631_v40, 0.0 }
 0x1b9   : > { %v638_v46 = vmax.f32 %v634_v42, 0.0 }
 0x1ba   : > { %v636_v48 = vmax.f32 %v632_v44, 0.0 }
 0x1bb   : > { %v640_v49 = vpack.c.bf16 %v638_v46, %v637_v45 }
 0x1bc   : > { %v639_v50 = vpack.c.bf16 %v636_v48, %v635_v47 }
 0x1be   : > { %1021 = vmatprep.mubr.bf16.mxu1 %v639_v50 }
 0x1bf   : > { %1022 = vmatmul.mubr.bf16.vlgmr.msra.gmra.mrb[0].mxu1 %v640_v49 }
 0x292   : > { %v1023_v52 = vpop.f32.mrb[0].mxu1 }
 0x293   : > { %v746_v53 = vpop.f32.mrb[1].mxu1  ;;  %v755_v58 = vadd.f32 %v1023_v52, %v922_v51 }
 0x294   : > { %v747_v54 = vadd.f32 %v922_v51, %v746_v53  ;;  %v1024_v55 = vpop.f32.mrb[2].mxu1 }
 0x295   : > { %v749_v56 = vpop.f32.mrb[3].mxu1  ;;  %v758_v59 = vadd.f32 %v1024_v55, %v922_v51  ;;  %764 = vst.msk [vmem:[%s383_s27 + $0x10] sm:$0xff] %vm761_vm0, %v755_v58 }
 0x296   : > { %762 = vst.msk [vmem:[%s383_s27] sm:$0xff] %vm761_vm0, %v747_v54  ;;  %v750_v57 = vadd.f32 %v922_v51, %v749_v56 }
 0x297   : > { %765 = vst.msk [vmem:[%s383_s27 + $0x18] sm:$0xff] %vm761_vm0, %v758_v59 }
 0x298   : > { %763 = vst.msk [vmem:[%s383_s27 + $0x8] sm:$0xff] %vm761_vm0, %v750_v57 }
 0x299 PF: > { %p21_p3 = scmp.ge.s32.totalorder %s1503_s20, 4   ;;  %s1683_s24 = smov %s1314_s25 }
 0x29a   : > { %s1684_s25 = smov %s1318_s26  ;;  %s1685_s26 = smov %s1513_s11 }
 0x29b   : > { %s1686_s27 = smov %s1503_s20  ;;  %23 = sbr.rel (!%p21_p3) target bundleno = 8 (0x8), region = 113 }
 0x2a2   :  { %788 = vsyncpa [#allocation3], 1 }
 0x2a3   :  { %790 = vsyncpa [#allocation3 + $0x1], 1 }
 0x2a4   :  { %791 = vsyncpa [#allocation5], 1 }
 0x2a5   :  { %793 = vsyncpa [#allocation5 + $0x1], 1 }
 0x2a6   :  { %794 = vsyncpa [#allocation8], 1 }

</bundles_post_ra>
